<compile_context>
chip_gen: v5e
topology: v5e:2x2
jax: 0.10.0
libtpu: 0.0.40
codegen_flags: <defaults>
</compile_context>

<pallas_src>
import jax
import jax.numpy as jnp
from jax import lax
from jax.experimental import pallas as pl
from jax.experimental.pallas import tpu as pltpu

# ---------------- configuration (the `opt` of the PyTorch module) ----------------
NUM_SEMANTICS = 8
NUM_THINGS = 3
SEM_LABEL_BAN = []                       # no banned semantic labels
MERGED_ACTIVATION = True                 # -> no "+1" extra semantic channel
FILL_CROP_ONLY = False
PANOPTIC = True
INSTANCE_TYPE = "center_offset_edge_density"
THINGS_STUFF = False                     # plain Softmax2d path
# TODO(synk): things_stuff=True branch (stuff/things split softmax + stuff*=last, drop last)
#             is not exercised by this config and is not implemented here.

OUT_SEMANTICS = NUM_SEMANTICS - len(SEM_LABEL_BAN)   # 8
INS_CHANNELS = 3 + 1 + NUM_THINGS                    # center(1)+offset(2)+edge(1)+density(3) = 7
TOTAL_CHANNELS = OUT_SEMANTICS + INS_CHANNELS        # 15

B, H, W = 2, 16, 16
HW = H * W


# ============================ Pallas kernel ============================

def _base_activation_kernel(x_ref, o_ref):
    # x_ref / o_ref: full (B, C, HW) slab resident in VMEM (gridless, single invocation).
    # HW = 256 sits on the lane axis (lane-dense, 2x128); channels sit on sublanes, so the
    # semantic rows 0:8 are exactly one f32 sublane group and the instance rows 8:15 start
    # sublane-aligned -- static slices, no relayout.

    # ---- sem_activation: Softmax2d == per-pixel softmax over the 8 semantic channels ----
    sem = x_ref[:, 0:OUT_SEMANTICS, :]                        # (B, 8, HW) f32
    m = jnp.max(sem, axis=1, keepdims=True)                   # (B, 1, HW)  cross-sublane reduce (XLU)
    e = jnp.exp(sem - m)                                      # EUP: 8 rows only
    inv = 1.0 / jnp.sum(e, axis=1, keepdims=True)             # exact reciprocal on one row
    o_ref[:, 0:OUT_SEMANTICS, :] = e * inv                    # lane-dense store

    # ---- ins_activation: [center(1) | offset(2) | edge(1) | density(3)] ----
    # Single transcendental pass: tanh(x) = 2*sigmoid(2x) - 1, so the offset channels reuse
    # the same sigmoid evaluation (one EUP pass over the 7-row block instead of tanh + sigmoid).
    ins = x_ref[:, OUT_SEMANTICS:TOTAL_CHANNELS, :]           # (B, 7, HW) f32
    ch = lax.broadcasted_iota(jnp.int32, ins.shape, 1)        # local channel index inside ins block
    is_offset = (ch >= 1) & (ch < 3)                          # offset channels (tanh)
    s = jax.nn.sigmoid(jnp.where(is_offset, 2.0 * ins, ins))
    o_ref[:, OUT_SEMANTICS:TOTAL_CHANNELS, :] = jnp.where(is_offset, 2.0 * s - 1.0, s)


def base_activation_forward(x_nchw):
    """BaseActivation.forward (as_list=False, return_sem_mask=False). NCHW in, NCHW out."""
    Bn, C, Hn, Wn = x_nchw.shape
    hw = Hn * Wn
    x_flat = x_nchw.reshape(Bn, C, hw)          # merge trailing spatial dims (cheap reshape)

    out = pl.pallas_call(
        _base_activation_kernel,
        out_shape=jax.ShapeDtypeStruct((Bn, C, hw), jnp.float32),
        # Whole array as one VMEM block, no grid: total traffic is ~30 KiB, so any tiling /
        # pipelining is pure fixed overhead.
        in_specs=[pl.BlockSpec(memory_space=pltpu.MemorySpace.VMEM)],
        out_specs=pl.BlockSpec(memory_space=pltpu.MemorySpace.VMEM),
        # Output reuses the input buffer (same shape/dtype); free here, helps if B/H/W grow.
        input_output_aliases={0: 0},
    )(x_flat)

    return out.reshape(Bn, C, Hn, Wn)


# ============================ pure-JAX reference ============================

def base_activation_ref(x):
    sem = x[:, :OUT_SEMANTICS]
    ins = x[:, OUT_SEMANTICS:]
    sem = jax.nn.softmax(sem, axis=1)                         # Softmax2d
    center = jax.nn.sigmoid(ins[:, 0:1])
    offset = jnp.tanh(ins[:, 1:3])
    edge = jax.nn.sigmoid(ins[:, 3:4])
    density = jax.nn.sigmoid(ins[:, 4:4 + NUM_THINGS])
    return jnp.concatenate([sem, center, offset, edge, density], axis=1)


if __name__ == "__main__":
    key = jax.random.PRNGKey(0)
    x = jax.random.normal(key, (B, TOTAL_CHANNELS, H, W), jnp.float32)

    fwd = jax.jit(base_activation_forward)
    out = fwd(x)
    jax.block_until_ready(out)

    assert out.shape == (B, TOTAL_CHANNELS, H, W)

    ref = base_activation_ref(x)
    err = float(jnp.max(jnp.abs(out - ref)))
    assert err < 1e-5, f"max abs err vs reference: {err}"

    print("KERNEL_OK")
</pallas_src>

<mosaic_0001>
module attributes {stable_mosaic.version = 11 : i64} {
  func.func @_base_activation_kernel(%arg0: memref<2x15x256xf32, #tpu.memory_space<vmem>>, %arg1: memref<2x15x256xf32, #tpu.memory_space<vmem>>) attributes {dimension_semantics = [], scalar_prefetch = 0 : i64, scratch_operands = 0 : i64, tpu.core_type = #tpu.core_type<tc>} {
    %c0 = arith.constant 0 : index
    %c0_0 = arith.constant 0 : index
    %c0_1 = arith.constant 0 : index
    %0 = vector.load %arg0[%c0, %c0_0, %c0_1] : memref<2x15x256xf32, #tpu.memory_space<vmem>>, vector<2x8x256xf32>
    %cst = arith.constant dense<0xFF800000> : vector<2x256xf32>
    %1 = vector.multi_reduction <maximumf>, %0, %cst [1] : vector<2x8x256xf32> to vector<2x256xf32>
    %2 = vector.shape_cast %1 : vector<2x256xf32> to vector<2x1x256xf32>
    %3 = vector.broadcast %2 : vector<2x1x256xf32> to vector<2x8x256xf32>
    %4 = arith.subf %0, %3 : vector<2x8x256xf32>
    %5 = math.exp %4 : vector<2x8x256xf32>
    %cst_2 = arith.constant dense<0.000000e+00> : vector<2x256xf32>
    %6 = vector.multi_reduction <add>, %5, %cst_2 [1] : vector<2x8x256xf32> to vector<2x256xf32>
    %7 = vector.shape_cast %6 : vector<2x256xf32> to vector<2x1x256xf32>
    %cst_3 = arith.constant 1.000000e+00 : f32
    %8 = vector.broadcast %cst_3 : f32 to vector<2x1x256xf32>
    %9 = arith.divf %8, %7 : vector<2x1x256xf32>
    %10 = vector.broadcast %9 : vector<2x1x256xf32> to vector<2x8x256xf32>
    %11 = arith.mulf %5, %10 : vector<2x8x256xf32>
    %c0_4 = arith.constant 0 : index
    %c0_5 = arith.constant 0 : index
    %c0_6 = arith.constant 0 : index
    %12 = vector.load %arg1[%c0_4, %c0_5, %c0_6] : memref<2x15x256xf32, #tpu.memory_space<vmem>>, vector<2x8x256xf32>
    tpu.vector_store %arg1[%c0_4, %c0_5, %c0_6], %11 {strides = array<i32>} : memref<2x15x256xf32, #tpu.memory_space<vmem>>, vector<2x8x256xf32>,
    %c0_7 = arith.constant 0 : index
    %c8 = arith.constant 8 : index
    %c0_8 = arith.constant 0 : index
    %13 = vector.load %arg0[%c0_7, %c8, %c0_8] : memref<2x15x256xf32, #tpu.memory_space<vmem>>, vector<2x7x256xf32>
    %14 = tpu.iota {dimensions = array<i32: 1>} : vector<2x7x256xi32>
    %c1_i32 = arith.constant 1 : i32
    %15 = vector.broadcast %c1_i32 : i32 to vector<2x7x256xi32>
    %16 = arith.cmpi sge, %14, %15 : vector<2x7x256xi32>
    %c3_i32 = arith.constant 3 : i32
    %17 = vector.broadcast %c3_i32 : i32 to vector<2x7x256xi32>
    %18 = arith.cmpi slt, %14, %17 : vector<2x7x256xi32>
    %19 = arith.andi %16, %18 : vector<2x7x256xi1>
    %cst_9 = arith.constant 2.000000e+00 : f32
    %20 = vector.broadcast %cst_9 : f32 to vector<2x7x256xf32>
    %21 = arith.mulf %20, %13 : vector<2x7x256xf32>
    %22 = arith.select %19, %21, %13 : vector<2x7x256xi1>, vector<2x7x256xf32>
    %23 = arith.negf %22 : vector<2x7x256xf32>
    %24 = math.exp %23 : vector<2x7x256xf32>
    %cst_10 = arith.constant 1.000000e+00 : f32
    %25 = vector.broadcast %cst_10 : f32 to vector<2x7x256xf32>
    %26 = arith.addf %25, %24 : vector<2x7x256xf32>
    %27 = arith.divf %25, %26 : vector<2x7x256xf32>
    %cst_11 = arith.constant 2.000000e+00 : f32
    %28 = vector.broadcast %cst_11 : f32 to vector<2x7x256xf32>
    %29 = arith.mulf %28, %27 : vector<2x7x256xf32>
    %cst_12 = arith.constant 1.000000e+00 : f32
    %30 = vector.broadcast %cst_12 : f32 to vector<2x7x256xf32>
    %31 = arith.subf %29, %30 : vector<2x7x256xf32>
    %32 = arith.select %19, %31, %27 : vector<2x7x256xi1>, vector<2x7x256xf32>
    %c0_13 = arith.constant 0 : index
    %c8_14 = arith.constant 8 : index
    %c0_15 = arith.constant 0 : index
    %33 = vector.load %arg1[%c0_13, %c8_14, %c0_15] : memref<2x15x256xf32, #tpu.memory_space<vmem>>, vector<2x7x256xf32>
    tpu.vector_store %arg1[%c0_13, %c8_14, %c0_15], %32 {strides = array<i32>} : memref<2x15x256xf32, #tpu.memory_space<vmem>>, vector<2x7x256xf32>,
    return
  }
}

</mosaic_0001>

<bundles_post_ra>
// kernel: base_activation_forward.1
= control target key start
LH: loop header
LB: loop body
LE: loop exit
PB: predicated region body
PF: predicated region fallthrough
CT: control target
= control target key end

     0   :  { %v144_v0 = vlaneseq  ;;  %s607_s0 = inlined_call_operand.vmem [shape: f32[2,15,256], index: 0, kind: input, shape index: {}, may-alias: {0,1}]   ;;  %s608_s1 = inlined_call_operand.vmem [shape: f32[2,15,256], index: 1, kind: output, shape index: {}, may-alias: {0,1}]  }
   0x1   :  { %v8_v1 = vld [vmem:[%s607_s0] sm:$0xff]  ;;  %v9_v2 = vld [vmem:[%s607_s0 + $0x8] sm:$0xff]  ;;  %v140_v8 = vld [vmem:[%s607_s0 + $0x10] sm:$0x7f] }
   0x2   :  { %v10_v3 = vld [vmem:[%s607_s0 + $0x20] sm:$0xff]  ;;  %v12_v4 = vrot.slane %v8_v1, 4  ;;  %v18_v5 = vrot.slane %v9_v2, 4  ;;  %v11_v7 = vld [vmem:[%s607_s0 + $0x28] sm:$0xff]  ;;  %v145_v10 = vshrl.u32 %v144_v0, 7  ;;  %v149_v11 = vmul.f32 2.0, %v140_v8 }
   0x3   :  { %v24_v6 = vrot.slane %v10_v3, 4  ;;  %v30_v9 = vrot.slane %v11_v7, 4  ;;  %v141_v12 = vld [vmem:[%s607_s0 + $0x18] sm:$0x7f]  ;;  %v142_v17 = vld [vmem:[%s607_s0 + $0x30] sm:$0x7f] }
   0x4   :  { %v13_v13 = vmax.f32 %v8_v1, %v12_v4  ;;  %v19_v14 = vmax.f32 %v9_v2, %v18_v5  ;;  %v150_v16 = vmul.f32 2.0, %v141_v12  ;;  %v143_v18 = vld [vmem:[%s607_s0 + $0x38] sm:$0x7f]  ;;  %vm146_vm0 = vcmp.ge.s32.totalorder %v145_v10, 1 }
   0x5   :  { %v25_v15 = vmax.f32 %v10_v3, %v24_v6  ;;  %v31_v19 = vmax.f32 %v11_v7, %v30_v9  ;;  %vm147_vm1 = vcmp.lt.s32.totalorder %v145_v10, 3  ;;  %v151_v20 = vmul.f32 2.0, %v142_v17 }
   0x6   :  { %v14_v21 = vrot.slane %v13_v13, 2  ;;  %v20_v22 = vrot.slane %v19_v14, 2  ;;  %vm327_vm2 = vmand %vm146_vm0, %vm147_vm1  ;;  %v152_v25 = vmul.f32 2.0, %v143_v18 }
   0x7   :  { %v26_v23 = vrot.slane %v25_v15, 2  ;;  %v32_v26 = vrot.slane %v31_v19, 2  ;;  %v153_v27 = vsel %vm327_vm2, %v149_v11, %v140_v8  ;;  %v154_v28 = vsel %vm327_vm2, %v150_v16, %v141_v12 }
   0x8   :  { %v155_v29 = vsel %vm327_vm2, %v151_v20, %v142_v17  ;;  %v15_v30 = vmax.f32 %v13_v13, %v14_v21  ;;  %v21_v31 = vmax.f32 %v19_v14, %v20_v22  ;;  %v253_v33 = vmul.f32 -1.442695, %v153_v27 }
   0x9   :  { %v27_v32 = vmax.f32 %v25_v15, %v26_v23  ;;  %v33_v34 = vmax.f32 %v31_v19, %v32_v26  ;;  %v254_v35 = vmul.f32 -1.442695, %v154_v28  ;;  %v255_v36 = vmul.f32 -1.442695, %v155_v29 }
   0xa   :  { %v156_v37 = vsel %vm327_vm2, %v152_v25, %v143_v18  ;;  %v16_v38 = vrot.slane %v15_v30, 1  ;;  %v22_v39 = vrot.slane %v21_v31, 1  ;;  %261 = vpow2.f32 %v253_v33 }
   0xb   :  { %v28_v40 = vrot.slane %v27_v32, 1  ;;  %v34_v41 = vrot.slane %v33_v34, 1  ;;  %263 = vpow2.f32 %v254_v35  ;;  %v256_v42 = vmul.f32 -1.442695, %v156_v37 }
   0xc   :  { %v17_v43 = vmax.f32 %v15_v30, %v16_v38  ;;  %v23_v44 = vmax.f32 %v21_v31, %v22_v39  ;;  %265 = vpow2.f32 %v255_v36 }
   0xd   :  { %v29_v45 = vmax.f32 %v27_v32, %v28_v40  ;;  %v35_v46 = vmax.f32 %v33_v34, %v34_v41  ;;  %267 = vpow2.f32 %v256_v42 }
   0xe   :  { %v36_v47 = vsub.f32 %v8_v1, %v17_v43  ;;  %v37_v48 = vsub.f32 %v9_v2, %v23_v44 }
   0xf   :  { %v38_v49 = vsub.f32 %v10_v3, %v29_v45  ;;  %v39_v50 = vsub.f32 %v11_v7, %v35_v46 }
  0x10   :  { %v262_v51 = vpop.eup %261  ;;  %v40_v52 = vmul.f32 1.442695, %v36_v47  ;;  %v42_v53 = vmul.f32 1.442695, %v37_v48 }
  0x11   :  { %v44_v54 = vmul.f32 1.442695, %v38_v49  ;;  %v264_v55 = vpop.eup %263  ;;  %v46_v56 = vmul.f32 1.442695, %v39_v50  ;;  %v339_v58 = vadd.f32 1.0, %v262_v51 }
  0x12   :  { %v266_v57 = vpop.eup %265  ;;  %269 = vpow2.f32 %v40_v52  ;;  %v341_v59 = vadd.f32 1.0, %v264_v55 }
  0x13   :  { %271 = vpow2.f32 %v42_v53  ;;  %v343_v60 = vadd.f32 1.0, %v266_v57  ;;  %v268_v61 = vpop.eup %267  ;;  %v184_v62 = vand.u32 2147483648, %v339_v58  ;;  %vm178_vm3 = vweird.f32 %v339_v58 }
  0x14   :  { %273 = vpow2.f32 %v44_v54  ;;  %v351_v0 = vadd.f32 1.0, %v268_v61  ;;  %v182_v5 = vand.u32 2147483647, %v339_v58  ;;  %v199_v6 = vand.u32 2147483648, %v341_v59 }
  0x15   :  { %275 = vpow2.f32 %v46_v56  ;;  %v367_v10 = vor.u32 1.1754944e-38, %v184_v62  ;;  %vm193_vm4 = vweird.f32 %v341_v59  ;;  %v197_v14 = vand.u32 2147483647, %v341_v59 }
  0x16   :  { %277 = vrcp.f32 %v339_v58  ;;  %v214_v15 = vand.u32 2147483648, %v343_v60  ;;  %v212_v20 = vand.u32 2147483647, %v343_v60  ;;  %v387_v26 = vor.u32 1.1754944e-38, %v199_v6 }
  0x17   :  { %279 = vrcp.f32 %v341_v59  ;;  %vm393_vm5 = vcmp.eq.f32.partialorder %v182_v5, 8.507059e+37  ;;  %vm397_vm6 = vcmp.eq.f32.partialorder %v197_v14, 8.507059e+37  ;;  %vm208_vm9 = vweird.f32 %v343_v60 }
  0x18   :  { %v348_v63 = vpop.eup %269  ;;  %281 = vrcp.f32 %v343_v60  ;;  %v401_v37 = vor.u32 1.1754944e-38, %v214_v15  ;;  %v227_v55 = vand.u32 2147483647, %v351_v0  ;;  %v229_v56 = vand.u32 2147483648, %v351_v0 }
  0x19   :  { %v353_v1 = vpop.eup %271  ;;  %v48_v2 = vrot.slane %v348_v63, 4  ;;  %283 = vrcp.f32 %v351_v0  ;;  %vm442_vm13 = vcmp.eq.f32.partialorder %v212_v20, 8.507059e+37  ;;  %vm223_vm15 = vweird.f32 %v351_v0 }
  0x1a   :  { %v357_v3 = vpop.eup %273  ;;  %v54_v4 = vrot.slane %v353_v1, 4 }
  0x1b   :  { %v363_v7 = vpop.eup %275  ;;  %v49_v8 = vadd.f32 %v348_v63, %v48_v2  ;;  %v60_v9 = vrot.slane %v357_v3, 4 }
  0x1c   :  { %v370_v11 = vpop.eup %277  ;;  %v55_v12 = vadd.f32 %v353_v1, %v54_v4  ;;  %v66_v13 = vrot.slane %v363_v7, 4 }
  0x1d   :  { %v376_v16 = vpop.eup %279  ;;  %v50_v17 = vrot.slane %v49_v8, 2  ;;  %v61_v18 = vadd.f32 %v357_v3, %v60_v9  ;;  %v174_v19 = vmul.f32 %v370_v11, %v339_v58  ;;  %vm179_vm7 = vweird.f32 %v370_v11 }
  0x1e   :  { %v382_v21 = vpop.eup %281  ;;  %v56_v22 = vrot.slane %v55_v12, 2  ;;  %v67_v23 = vadd.f32 %v363_v7, %v66_v13  ;;  %v189_v25 = vmul.f32 %v376_v16, %v341_v59  ;;  %vm194_vm8 = vweird.f32 %v376_v16  ;;  %vm417_vm10 = vmor %vm178_vm3, %vm179_vm7 }
  0x1f   :  { %v51_v27 = vadd.f32 %v50_v17, %v49_v8  ;;  %v62_v28 = vrot.slane %v61_v18, 2  ;;  %v175_v29 = vsub.f32 1.0, %v174_v19  ;;  %v204_v30 = vmul.f32 %v382_v21, %v343_v60  ;;  %v391_v31 = vpop.eup %283  ;;  %vm426_vm11 = vmor %vm193_vm4, %vm194_vm8 }
  0x20   :  { %v57_v32 = vadd.f32 %v56_v22, %v55_v12  ;;  %v68_v33 = vrot.slane %v67_v23, 2  ;;  %v190_v35 = vsub.f32 1.0, %v189_v25  ;;  %v219_v47 = vmul.f32 %v391_v31, %v351_v0 }
  0x21   :  { %v52_v38 = vrot.slane %v51_v27, 1  ;;  %v63_v39 = vadd.f32 %v62_v28, %v61_v18  ;;  %v176_v40 = vmul.f32 %v370_v11, %v175_v29  ;;  %v205_v46 = vsub.f32 1.0, %v204_v30 }
  0x22   :  { %v58_v41 = vrot.slane %v57_v32, 1  ;;  %v69_v42 = vadd.f32 %v68_v33, %v67_v23  ;;  %v191_v43 = vmul.f32 %v376_v16, %v190_v35  ;;  %vm209_vm12 = vweird.f32 %v382_v21 }
  0x23   :  { %v408_v44 = vadd.f32 %v52_v38, %v51_v27  ;;  %v64_v45 = vrot.slane %v63_v39, 1  ;;  %v177_v50 = vadd.f32 %v370_v11, %v176_v40  ;;  %v206_v2 = vmul.f32 %v382_v21, %v205_v46 }
  0x24   :  { %v412_v48 = vadd.f32 %v58_v41, %v57_v32  ;;  %v70_v49 = vrot.slane %v69_v42, 1  ;;  %v192_v52 = vadd.f32 %v376_v16, %v191_v43  ;;  %v220_v8 = vsub.f32 1.0, %v219_v47 }
  0x25   :  { %285 = vrcp.f32 %v408_v44  ;;  %v83_v53 = vand.u32 2147483648, %v408_v44  ;;  %v81_v57 = vand.u32 2147483647, %v408_v44  ;;  %v437_v62 = vadd.f32 %v64_v45, %v63_v39 }
  0x26   :  { %287 = vrcp.f32 %v412_v48  ;;  %v98_v58 = vand.u32 2147483648, %v412_v48  ;;  %v96_v61 = vand.u32 2147483647, %v412_v48  ;;  %v439_v59 = vadd.f32 %v70_v49, %v69_v42 }
  0x27   :  { %vm77_vm14 = vweird.f32 %v408_v44  ;;  %v181_v5 = vsel %vm417_vm10, %v370_v11, %v177_v50  ;;  %v196_v6 = vsel %vm426_vm11, %v376_v16, %v192_v52  ;;  %v454_v9 = vor.u32 1.1754944e-38, %v83_v53 }
  0x28   :  { %vm92_vm0 = vweird.f32 %v412_v48  ;;  %289 = vrcp.f32 %v437_v62  ;;  %v113_v12 = vand.u32 2147483648, %v437_v62  ;;  %vm459_vm1 = vcmp.eq.f32.partialorder %v81_v57, 8.507059e+37 }
  0x29   :  { %v463_v11 = vor.u32 1.1754944e-38, %v98_v58  ;;  %v111_v14 = vand.u32 2147483647, %v437_v62  ;;  %291 = vrcp.f32 %v439_v59  ;;  %vm468_vm4 = vcmp.eq.f32.partialorder %v96_v61, 8.507059e+37 }
  0x2a   :  { %v126_v17 = vand.u32 2147483647, %v439_v59  ;;  %v186_v18 = vsel %vm393_vm5, %v367_v10, %v181_v5  ;;  %v201_v19 = vsel %vm397_vm6, %v387_v26, %v196_v6  ;;  %v481_v23 = vor.u32 1.1754944e-38, %v113_v12  ;;  %vm493_vm5 = vmor %vm208_vm9, %vm209_vm12 }
  0x2b   :  { %v286_v15 = vpop.eup %285  ;;  %v128_v25 = vand.u32 2147483648, %v439_v59  ;;  %vm484_vm10 = vcmp.eq.f32.partialorder %v227_v55, 8.507059e+37  ;;  %v233_v10 = vmul.f32 2.0, %v186_v18  ;;  %v234_v29 = vmul.f32 2.0, %v201_v19 }
  0x2c   :  { %v288_v20 = vpop.eup %287  ;;  %v73_v22 = vmul.f32 %v286_v15, %v408_v44  ;;  %vm78_vm8 = vweird.f32 %v286_v15  ;;  %vm497_vm6 = vcmp.eq.f32.partialorder %v111_v14, 8.507059e+37  ;;  %v207_v33 = vadd.f32 %v382_v21, %v206_v2 }
  0x2d   :  { %v88_v28 = vmul.f32 %v288_v20, %v412_v48  ;;  %vm93_vm11 = vweird.f32 %v288_v20  ;;  %v221_v34 = vmul.f32 %v391_v31, %v220_v8  ;;  %vm224_vm7 = vweird.f32 %v391_v31  ;;  %vm511_vm12 = vmor %vm77_vm14, %vm78_vm8 }
  0x2e   :  { %v74_v30 = vsub.f32 1.0, %v73_v22  ;;  %v290_v35 = vpop.eup %289  ;;  %v257_v38 = vadd.f32 -1.0, %v233_v10  ;;  %v258_v39 = vadd.f32 -1.0, %v234_v29  ;;  %v230_v60 = vor.u32 1.1754944e-38, %v229_v56  ;;  %vm521_vm9 = vmor %vm92_vm0, %vm93_vm11 }
  0x2f   :  { %v89_v36 = vsub.f32 1.0, %v88_v28  ;;  %v292_v40 = vpop.eup %291  ;;  %v103_v42 = vmul.f32 %v290_v35, %v437_v62  ;;  %v211_v43 = vsel %vm493_vm5, %v382_v21, %v207_v33  ;;  %v222_v55 = vadd.f32 %v391_v31, %v221_v34  ;;  %vm541_vm14 = vmor %vm223_vm15, %vm224_vm7 }
  0x30   :  { %v75_v41 = vmul.f32 %v286_v15, %v74_v30  ;;  %v118_v47 = vmul.f32 %v292_v40, %v439_v59  ;;  %vm123_vm3 = vweird.f32 %v292_v40  ;;  %v241_v49 = vsel %vm327_vm2, %v257_v38, %v186_v18 }
  0x31   :  { %v90_v46 = vmul.f32 %v288_v20, %v89_v36  ;;  %v104_v44 = vsub.f32 1.0, %v103_v42  ;;  %245 = vst [vmem:[%s608_s1 + $0x10] sm:$0x7f] %v241_v49  ;;  %v242_v51 = vsel %vm327_vm2, %v258_v39, %v201_v19  ;;  %v216_v52 = vsel %vm442_vm13, %v401_v37, %v211_v43 }
  0x32   :  { %v76_v50 = vadd.f32 %v286_v15, %v75_v41  ;;  %v119_v54 = vsub.f32 1.0, %v118_v47  ;;  %246 = vst [vmem:[%s608_s1 + $0x18] sm:$0x7f] %v242_v51  ;;  %v235_v48 = vmul.f32 2.0, %v216_v52  ;;  %vm547_vm13 = vcmp.eq.f32.partialorder %v126_v17, 8.507059e+37 }
  0x33   :  { %v91_v53 = vadd.f32 %v288_v20, %v90_v46  ;;  %v105_v57 = vmul.f32 %v290_v35, %v104_v44  ;;  %v129_v61 = vor.u32 1.1754944e-38, %v128_v25  ;;  %vm639_vm15 = vweird.f32 %v290_v35 }
  0x34   :  { %v80_v37 = vsel %vm511_vm12, %v286_v15, %v76_v50  ;;  %vm640_vm0 = vweird.f32 %v437_v62  ;;  %v120_v5 = vmul.f32 %v292_v40, %v119_v54  ;;  %v259_v6 = vadd.f32 -1.0, %v235_v48 }
  0x35   :  { %v85_v2 = vsel %vm459_vm1, %v454_v9, %v80_v37  ;;  %v95_v0 = vsel %vm521_vm9, %v288_v20, %v91_v53  ;;  %vm559_vm7 = vmor %vm640_vm0, %vm639_vm15  ;;  %v106_v13 = vadd.f32 %v290_v35, %v105_v57  ;;  %vm643_vm1 = vweird.f32 %v439_v59 }
  0x36   :  { %v132_v8 = vmul.f32 %v348_v63, %v85_v2  ;;  %v100_v12 = vsel %vm468_vm4, %v463_v11, %v95_v0  ;;  %vm124_vm8 = vmor %vm643_vm1, %vm123_vm3  ;;  %v226_v62 = vsel %vm541_vm14, %v391_v31, %v222_v55  ;;  %v121_v14 = vadd.f32 %v292_v40, %v120_v5 }
  0x37   :  { %v133_v9 = vmul.f32 %v353_v1, %v100_v12  ;;  %v243_v15 = vsel %vm327_vm2, %v259_v6, %v216_v52  ;;  %v231_v63 = vsel %vm484_vm10, %v230_v60, %v226_v62  ;;  %v110_v59 = vsel %vm559_vm7, %v290_v35, %v106_v13 }
  0x38   :  { %136 = vst [vmem:[%s608_s1] sm:$0xff] %v132_v8  ;;  %v236_v11 = vmul.f32 2.0, %v231_v63  ;;  %v115_v1 = vsel %vm497_vm6, %v481_v23, %v110_v59  ;;  %v125_v31 = vsel %vm124_vm8, %v292_v40, %v121_v14 }
  0x39   :  { %137 = vst [vmem:[%s608_s1 + $0x8] sm:$0xff] %v133_v9  ;;  %v134_v16 = vmul.f32 %v357_v3, %v115_v1  ;;  %v130_v17 = vsel %vm547_vm13, %v129_v61, %v125_v31 }
  0x3a   :  { %247 = vst [vmem:[%s608_s1 + $0x30] sm:$0x7f] %v243_v15  ;;  %v260_v18 = vadd.f32 -1.0, %v236_v11  ;;  %v135_v19 = vmul.f32 %v363_v7, %v130_v17 }
  0x3b   :  { %138 = vst [vmem:[%s608_s1 + $0x20] sm:$0xff] %v134_v16 }
  0x3c   :  { %v244_v20 = vsel %vm327_vm2, %v260_v18, %v231_v63  ;;  %139 = vst [vmem:[%s608_s1 + $0x28] sm:$0xff] %v135_v19 }
  0x3d   :  { %248 = vst [vmem:[%s608_s1 + $0x38] sm:$0x7f] %v244_v20 }

</bundles_post_ra>
